<compile_context>
chip_gen: v6e
topology: v6e:2x2x1
jax: 0.10.0
libtpu: 0.0.40
codegen_flags: <defaults>
</compile_context>

<pallas_src>
import math

import jax
import jax.numpy as jnp
from jax.experimental import pallas as pl
from jax.experimental.pallas import tpu as pltpu

_P = 128  # lane-aligned padded feature width for hidden / output features


def _round_up(n, m):
    return ((n + m - 1) // m) * m


def _mlp_kernel(x_ref, w1_ref, w_ref, b_ref, o_ref):
    # x_ref:  (TB, D_in)     native (unpadded) input features
    # w1_ref: (D_in, 128)    layer-1 weight, output dim zero-padded to 128
    # w_ref:  (3, 128, 128)  layers 2..4 weights, both dims zero-padded to 128
    # b_ref:  (8, 128)       rows 0..3 = biases of layers 1..4 (zero-padded)
    # o_ref:  (TB, 128)      lane-dense padded output
    x = x_ref[...]

    # linear1 + relu  (K = D_in, unpadded; N = 128)
    h1 = jnp.dot(x, w1_ref[...], preferred_element_type=jnp.float32) + b_ref[0:1, :]
    h1 = jnp.maximum(h1, 0.0)

    # linear2 (no activation)
    h2 = jnp.dot(h1, w_ref[0], preferred_element_type=jnp.float32) + b_ref[1:2, :]

    # linear3 + relu
    h3 = jnp.dot(h2, w_ref[1], preferred_element_type=jnp.float32) + b_ref[2:3, :]
    h3 = jnp.maximum(h3, 0.0)

    # linear4
    y = jnp.dot(h3, w_ref[2], preferred_element_type=jnp.float32) + b_ref[3:4, :]
    o_ref[...] = y.astype(o_ref.dtype)


def pack_params(params, dtype=jnp.float32):
    """One-time packing of the 4 Linear layers into lane-padded slabs.

    Done once at parameter-creation time (hoisted out of the forward path).
    dtype=jnp.bfloat16 is a valid option on v6e/v7x for full-rate MXU and
    halved weight bytes (accumulation stays f32); default f32 for exactness.
    """
    (w1, b1), (w2, b2), (w3, b3), (w4, b4) = params
    D_in, H = w1.shape
    D_out = w4.shape[1]

    def pad_w(w):
        fi, fo = w.shape
        return jnp.zeros((_P, _P), dtype).at[:fi, :fo].set(w.astype(dtype))

    def pad_b(b):
        b = b.reshape(-1)
        return jnp.zeros((_P,), dtype).at[: b.shape[0]].set(b.astype(dtype))

    # layer-1 weight keeps its native input (K) dim; only the output dim pads.
    w1p = jnp.zeros((D_in, _P), dtype).at[:, :H].set(w1.astype(dtype))
    wrest = jnp.stack([pad_w(w2), pad_w(w3), pad_w(w4)])          # (3,128,128)
    bs = (jnp.zeros((8, _P), dtype)
          .at[0].set(pad_b(b1)).at[1].set(pad_b(b2))
          .at[2].set(pad_b(b3)).at[3].set(pad_b(b4)))              # (8,128)
    return w1p, wrest, bs, D_out


def _choose_tb(B, tb_max=1024):
    """Pick a batch tile: >=2 grid steps when possible (v7x 2 TCs), minimal
    pad-row waste, then largest tile (amortizes ~0.35us/step overhead)."""
    pB8 = _round_up(B, 8)
    if pB8 <= 128:
        return pB8                      # tiny batch: single tile, grid=1
    best_key, best_tb = None, 128
    for cand in (128, 256, 512, 1024):
        if cand > tb_max:
            continue
        pB = _round_up(B, cand)
        key = (0 if pB // cand >= 2 else 1, pB - B, -cand)
        if best_key is None or key < best_key:
            best_key, best_tb = key, cand
    return best_tb


def mlp_forward(x, packed, *, tb_max=1024, return_padded=False):
    """4-layer MLP forward in a single Pallas kernel, batch-tiled over a
    parallel grid.  `packed` comes from pack_params() (computed once)."""
    w1p, wrest, bs, D_out = packed
    B, D_in = x.shape
    assert w1p.shape[0] == D_in, "x feature dim must match packed layer-1 weight"

    TB = _choose_tb(B, tb_max)
    pB = _round_up(B, TB)
    # Batch-dim padding only; no copy at all when B already tiles evenly.
    xp = x if pB == B else jnp.zeros((pB, D_in), x.dtype).at[:B].set(x)
    n_tiles = pB // TB

    itemsize = jnp.dtype(w1p.dtype).itemsize
    cost = pl.CostEstimate(
        flops=2 * pB * (D_in * _P + 3 * _P * _P),
        transcendentals=0,
        bytes_accessed=(xp.size * jnp.dtype(xp.dtype).itemsize
                        + pB * _P * 4
                        + (w1p.size + wrest.size + bs.size) * itemsize),
    )

    out = pl.pallas_call(
        _mlp_kernel,
        out_shape=jax.ShapeDtypeStruct((pB, _P), jnp.float32),
        grid=(n_tiles,),
        in_specs=[
            pl.BlockSpec((TB, D_in), lambda i: (i, 0)),       # x tile, native width
            pl.BlockSpec((D_in, _P), lambda i: (0, 0)),       # layer-1 weight, resident
            pl.BlockSpec((3, _P, _P), lambda i: (0, 0, 0)),   # layers 2..4, resident
            pl.BlockSpec((8, _P), lambda i: (0, 0)),          # biases, resident
        ],
        out_specs=pl.BlockSpec((TB, _P), lambda i: (i, 0)),
        compiler_params=pltpu.CompilerParams(
            dimension_semantics=("parallel",)),
        cost_estimate=cost,
    )(xp, w1p, wrest, bs)

    if return_padded:
        # lane-dense (pB, 128) activation slab; avoids an extra HBM pass if the
        # consumer can take the padded layout.
        return out
    return out[:B, :D_out]


def init_linear(key, fan_in, fan_out):
    """PyTorch nn.Linear default init (uniform +-1/sqrt(fan_in)), weight stored (in, out)."""
    kw, kb = jax.random.split(key)
    bound = 1.0 / math.sqrt(fan_in)
    w = jax.random.uniform(kw, (fan_in, fan_out), jnp.float32, -bound, bound)
    b = jax.random.uniform(kb, (1, fan_out), jnp.float32, -bound, bound)
    return w, b


def reference_forward(x, params):
    (w1, b1), (w2, b2), (w3, b3), (w4, b4) = params
    h1 = jnp.maximum(x @ w1 + b1, 0.0)
    h2 = h1 @ w2 + b2
    h3 = jnp.maximum(h2 @ w3 + b3, 0.0)
    return h3 @ w4 + b4


if __name__ == "__main__":
    # Shapes implied by the module: Linear(D_in,H), Linear(H,100), Linear(H,100),
    # Linear(100,D_out).  forward composes linear3 o linear2, so H must be 100.
    B, D_in, H, D_out = 8, 32, 100, 10

    key = jax.random.PRNGKey(0)
    kx, k1, k2, k3, k4 = jax.random.split(key, 5)

    x = jax.random.normal(kx, (B, D_in), jnp.float32)
    params = (
        init_linear(k1, D_in, H),     # linear1
        init_linear(k2, H, 100),      # linear2
        init_linear(k3, 100, 100),    # linear3 (H==100)
        init_linear(k4, 100, D_out),  # linear4
    )

    # One-time packing of weights/biases into padded slabs (hoisted off the
    # per-call path).
    packed = jax.tree_util.tree_map(jax.block_until_ready, pack_params(params))

    y = mlp_forward(x, packed)
    y = jax.block_until_ready(y)

    y_ref = reference_forward(x, params)
    assert y.shape == (B, D_out)
    assert jnp.allclose(y, y_ref, atol=1e-4, rtol=1e-4), "mismatch vs JAX reference"

    print("KERNEL_OK")
</pallas_src>

<mosaic_0001>
module attributes {stable_mosaic.version = 11 : i64} {
  func.func @_mlp_kernel(%arg0: i32, %arg1: memref<8x32xf32, #tpu.memory_space<vmem>>, %arg2: memref<32x128xf32, #tpu.memory_space<vmem>>, %arg3: memref<3x128x128xf32, #tpu.memory_space<vmem>>, %arg4: memref<8x128xf32, #tpu.memory_space<vmem>>, %arg5: memref<8x128xf32, #tpu.memory_space<vmem>>) attributes {dimension_semantics = [#tpu.dimension_semantics<parallel>], iteration_bounds = array<i64: 1>, scalar_prefetch = 0 : i64, scratch_operands = 0 : i64, tpu.core_type = #tpu.core_type<tc>, window_params = [{transform_indices = @transform_0, window_bounds = array<i64: 8, 32>}, {pipeline_mode = #tpu.pipeline_mode<synchronous>, transform_indices = @transform_1, window_bounds = array<i64: 32, 128>}, {pipeline_mode = #tpu.pipeline_mode<synchronous>, transform_indices = @transform_2, window_bounds = array<i64: 3, 128, 128>}, {pipeline_mode = #tpu.pipeline_mode<synchronous>, transform_indices = @transform_3, window_bounds = array<i64: 8, 128>}, {transform_indices = @transform_4, window_bounds = array<i64: 8, 128>}]} {
    %c0 = arith.constant 0 : index
    %c0_0 = arith.constant 0 : index
    %0 = vector.load %arg1[%c0, %c0_0] : memref<8x32xf32, #tpu.memory_space<vmem>>, vector<8x32xf32>
    %c0_1 = arith.constant 0 : index
    %c0_2 = arith.constant 0 : index
    %1 = vector.load %arg2[%c0_1, %c0_2] : memref<32x128xf32, #tpu.memory_space<vmem>>, vector<32x128xf32>
    %cst = arith.constant dense<0.000000e+00> : vector<8x128xf32>
    %2 = tpu.matmul %0, %1, %cst {dimension_numbers = #tpu.dot_dimension_numbers<[1], [0], [0], [1], [0, 0, 1, 1], [], []>} : vector<8x32xf32>, vector<32x128xf32>, vector<8x128xf32> -> vector<8x128xf32>
    %c0_3 = arith.constant 0 : index
    %c0_4 = arith.constant 0 : index
    %3 = vector.load %arg4[%c0_3, %c0_4] : memref<8x128xf32, #tpu.memory_space<vmem>>, vector<1x128xf32>
    %4 = vector.broadcast %3 : vector<1x128xf32> to vector<8x128xf32>
    %5 = arith.addf %2, %4 : vector<8x128xf32>
    %cst_5 = arith.constant 0.000000e+00 : f32
    %6 = vector.broadcast %cst_5 : f32 to vector<8x128xf32>
    %7 = arith.maximumf %5, %6 : vector<8x128xf32>
    %c0_6 = arith.constant 0 : index
    %c0_7 = arith.constant 0 : index
    %c0_8 = arith.constant 0 : index
    %8 = vector.load %arg3[%c0_6, %c0_7, %c0_8] : memref<3x128x128xf32, #tpu.memory_space<vmem>>, vector<1x128x128xf32>
    %9 = vector.shape_cast %8 : vector<1x128x128xf32> to vector<128x128xf32>
    %cst_9 = arith.constant dense<0.000000e+00> : vector<8x128xf32>
    %10 = tpu.matmul %7, %9, %cst_9 {dimension_numbers = #tpu.dot_dimension_numbers<[1], [0], [0], [1], [0, 0, 1, 1], [], []>} : vector<8x128xf32>, vector<128x128xf32>, vector<8x128xf32> -> vector<8x128xf32>
    %c1 = arith.constant 1 : index
    %c0_10 = arith.constant 0 : index
    %11 = vector.load %arg4[%c1, %c0_10] : memref<8x128xf32, #tpu.memory_space<vmem>>, vector<1x128xf32>
    %12 = vector.broadcast %11 : vector<1x128xf32> to vector<8x128xf32>
    %13 = arith.addf %10, %12 : vector<8x128xf32>
    %c1_11 = arith.constant 1 : index
    %c0_12 = arith.constant 0 : index
    %c0_13 = arith.constant 0 : index
    %14 = vector.load %arg3[%c1_11, %c0_12, %c0_13] : memref<3x128x128xf32, #tpu.memory_space<vmem>>, vector<1x128x128xf32>
    %15 = vector.shape_cast %14 : vector<1x128x128xf32> to vector<128x128xf32>
    %cst_14 = arith.constant dense<0.000000e+00> : vector<8x128xf32>
    %16 = tpu.matmul %13, %15, %cst_14 {dimension_numbers = #tpu.dot_dimension_numbers<[1], [0], [0], [1], [0, 0, 1, 1], [], []>} : vector<8x128xf32>, vector<128x128xf32>, vector<8x128xf32> -> vector<8x128xf32>
    %c2 = arith.constant 2 : index
    %c0_15 = arith.constant 0 : index
    %17 = vector.load %arg4[%c2, %c0_15] : memref<8x128xf32, #tpu.memory_space<vmem>>, vector<1x128xf32>
    %18 = vector.broadcast %17 : vector<1x128xf32> to vector<8x128xf32>
    %19 = arith.addf %16, %18 : vector<8x128xf32>
    %cst_16 = arith.constant 0.000000e+00 : f32
    %20 = vector.broadcast %cst_16 : f32 to vector<8x128xf32>
    %21 = arith.maximumf %19, %20 : vector<8x128xf32>
    %c2_17 = arith.constant 2 : index
    %c0_18 = arith.constant 0 : index
    %c0_19 = arith.constant 0 : index
    %22 = vector.load %arg3[%c2_17, %c0_18, %c0_19] : memref<3x128x128xf32, #tpu.memory_space<vmem>>, vector<1x128x128xf32>
    %23 = vector.shape_cast %22 : vector<1x128x128xf32> to vector<128x128xf32>
    %cst_20 = arith.constant dense<0.000000e+00> : vector<8x128xf32>
    %24 = tpu.matmul %21, %23, %cst_20 {dimension_numbers = #tpu.dot_dimension_numbers<[1], [0], [0], [1], [0, 0, 1, 1], [], []>} : vector<8x128xf32>, vector<128x128xf32>, vector<8x128xf32> -> vector<8x128xf32>
    %c3 = arith.constant 3 : index
    %c0_21 = arith.constant 0 : index
    %25 = vector.load %arg4[%c3, %c0_21] : memref<8x128xf32, #tpu.memory_space<vmem>>, vector<1x128xf32>
    %26 = vector.broadcast %25 : vector<1x128xf32> to vector<8x128xf32>
    %27 = arith.addf %24, %26 : vector<8x128xf32>
    %c0_22 = arith.constant 0 : index
    %c0_23 = arith.constant 0 : index
    %28 = vector.load %arg5[%c0_22, %c0_23] : memref<8x128xf32, #tpu.memory_space<vmem>>, vector<8x128xf32>
    tpu.vector_store %arg5[%c0_22, %c0_23], %27 {strides = array<i32>} : memref<8x128xf32, #tpu.memory_space<vmem>>, vector<8x128xf32>,
    return
  }
  func.func @transform_0(%arg0: i32) -> (i32, i32) {
    %c0_i32 = arith.constant 0 : i32
    %c0_i32_0 = arith.constant 0 : i32
    return %arg0, %c0_i32 : i32, i32
  }
  func.func @transform_1(%arg0: i32) -> (i32, i32) {
    %c0_i32 = arith.constant 0 : i32
    %c0_i32_0 = arith.constant 0 : i32
    %c0_i32_1 = arith.constant 0 : i32
    return %c0_i32, %c0_i32_0 : i32, i32
  }
  func.func @transform_2(%arg0: i32) -> (i32, i32, i32) {
    %c0_i32 = arith.constant 0 : i32
    %c0_i32_0 = arith.constant 0 : i32
    %c0_i32_1 = arith.constant 0 : i32
    %c0_i32_2 = arith.constant 0 : i32
    return %c0_i32, %c0_i32_0, %c0_i32_1 : i32, i32, i32
  }
  func.func @transform_3(%arg0: i32) -> (i32, i32) {
    %c0_i32 = arith.constant 0 : i32
    %c0_i32_0 = arith.constant 0 : i32
    %c0_i32_1 = arith.constant 0 : i32
    return %c0_i32, %c0_i32_0 : i32, i32
  }
  func.func @transform_4(%arg0: i32) -> (i32, i32) {
    %c0_i32 = arith.constant 0 : i32
    %c0_i32_0 = arith.constant 0 : i32
    return %arg0, %c0_i32 : i32, i32
  }
}

</mosaic_0001>

<bundles_post_ra>
// kernel: tpu_custom_call.1
= control target key start
LH: loop header
LB: loop body
LE: loop exit
PB: predicated region body
PF: predicated region fallthrough
CT: control target
= control target key end

     0   :  { %9 = vsyncpa [#allocation3], 0  ;;  %s851_s0 = inlined_call_operand.hbm [shape: f32[8,32], index: 0, kind: input, shape index: {}]   ;;  %s852_s1 = inlined_call_operand.hbm [shape: f32[32,128], index: 1, kind: input, shape index: {}]   ;;  %s853_s2 = inlined_call_operand.hbm [shape: f32[3,128,128], index: 2, kind: input, shape index: {}]   ;;  %s854_s3 = inlined_call_operand.hbm [shape: f32[8,128], index: 3, kind: input, shape index: {}]   ;;  %s855_s4 = inlined_call_operand.hbm [shape: f32[8,128], index: 4, kind: output, shape index: {}]  }
   0x1   :  { %10 = vsyncpa [#allocation6], 0 }
   0x2   :  { %11 = vsyncpa [#allocation9], 0 }
   0x3   :  { %12 = vsyncpa [#allocation4], 0  ;;  %s742_s15 = smov [#allocation5]  }
   0x4   :  { %s28_s16 = sshll.u32 %s742_s15, 4  ;;  %s29_s16 = int_to_ptr.vmem [resolvable:$true] %s28_s16 }
   0x5   :  { %s642_s17 = scalar_lea.vmem %s29_s16, 512  ;;  %p647_p1 = scmp.lt.s32.totalorder %s29_s16, %s29_s16 }
   0x6   :  { %p643_p0 = scmp.ne.s32.totalorder %s29_s16, %s642_s17  ;;  %p648_p2 = scmp.lt.s32.totalorder %s642_s17, %s642_s17 }
   0x8   :  { %p649_p3 = por %p648_p2, %p647_p1 }
   0xa   :  { %p650_p4 = pnand %p649_p3, %p643_p0 }
   0xc   :  { %653 = shalt.err (!%p650_p4)
}
   0xd   :  { %s743_s18 = smov 128   ;;  %s744_s19 = smov 8  }
   0xe   :  { %34 = dma.hbm_to_vmem [thread:$0]  %s852_s1, 512, %s29_s16, [#allocation6], %s743_s18, %s743_s18, %s744_s19  }
   0xf   :  { %s745_s22 = smov [#allocation2]   ;;  %s746_s24 = smov [#allocation7]  }
  0x10   :  { %s19_s23 = sshll.u32 %s745_s22, 4  ;;  %s40_s25 = sshll.u32 %s746_s24, 4  ;;  %s20_s23 = int_to_ptr.vmem [resolvable:$true] %s19_s23  ;;  %s41_s25 = int_to_ptr.vmem [resolvable:$true] %s40_s25 }
  0x11   :  { %s662_s26 = scalar_lea.vmem %s20_s23, 128  ;;  %p667_p6 = scmp.lt.s32.totalorder %s20_s23, %s20_s23 }
  0x12   :  { %p663_p5 = scmp.ne.s32.totalorder %s20_s23, %s662_s26  ;;  %p668_p7 = scmp.lt.s32.totalorder %s662_s26, %s662_s26 }
  0x14   :  { %p669_p8 = por %p668_p7, %p667_p6 }
  0x16   :  { %p670_p9 = pnand %p669_p8, %p663_p5 }
  0x18   :  { %673 = shalt.err (!%p670_p9)
}
  0x19   :  { %22 = dma.hbm_to_vmem [thread:$0]  %s851_s0, 128, %s20_s23, [#allocation3]  }
  0x1a   :  { %s682_s29 = scalar_lea.vmem %s41_s25, 6144  ;;  %p687_p11 = scmp.lt.s32.totalorder %s41_s25, %s41_s25 }
  0x1b   :  { %p683_p10 = scmp.ne.s32.totalorder %s41_s25, %s682_s29  ;;  %p688_p12 = scmp.lt.s32.totalorder %s682_s29, %s682_s29 }
  0x1d   :  { %p689_p13 = por %p688_p12, %p687_p11 }
  0x1f   :  { %p690_p0 = pnand %p689_p13, %p683_p10 }
  0x21   :  { %693 = shalt.err (!%p690_p0)
}
  0x22   :  { %46 = dma.hbm_to_vmem [thread:$0]  %s853_s2, 6144, %s41_s25, [#allocation6], %s743_s18, %s743_s18, %s744_s19  }
  0x23   :  { %s747_s5 = smov [#allocation8]  }
  0x24   :  { %s53_s6 = sshll.u32 %s747_s5, 4  ;;  %s54_s6 = int_to_ptr.vmem [resolvable:$true] %s53_s6 }
  0x25   :  { %s702_s7 = scalar_lea.vmem %s54_s6, 128  ;;  %p707_p2 = scmp.lt.s32.totalorder %s54_s6, %s54_s6 }
  0x26   :  { %p703_p1 = scmp.ne.s32.totalorder %s54_s6, %s702_s7  ;;  %p708_p3 = scmp.lt.s32.totalorder %s702_s7, %s702_s7 }
  0x28   :  { %p709_p4 = por %p708_p3, %p707_p2 }
  0x2a   :  { %p710_p5 = pnand %p709_p4, %p703_p1 }
  0x2c   :  { %713 = shalt.err (!%p710_p5)
}
  0x2d   :  { %56 = dma.hbm_to_vmem [thread:$0]  %s854_s3, 128, %s54_s6, [#allocation9]  }
  0x2e   :  { %734 = dma.done.wait [#allocation3], 128  }
  0x2f   :  { %735 = vsyncadd [#allocation3], 4294967168 }
  0x30   :  { %736 = dma.done.wait [#allocation6], 6656  }
  0x31   :  { %737 = vsyncadd [#allocation6], 4294960640 }
  0x32   :  { %738 = dma.done.wait [#allocation9], 128  }
  0x33   :  { %739 = vsyncadd [#allocation9], 4294967168  ;;  %v748_v0 = vmov 0.0   ;;  %vm749_vm0 = vmmov 0   ;;  %v73_v1 = vld [vmem:[#allocation5 + $0x18] sm:$0xff]  ;;  %v72_v2 = vld [vmem:[#allocation5 + $0x10] sm:$0xff] }
  0x34   :  { %509 = vmatprep.subr.mxu0 %v748_v0  ;;  %517 = vmatprep.mubr.msk.f32.mxu0 %vm749_vm0, %v748_v0  ;;  %v169_v3 = vld [vmem:[#allocation7 + $0x78] sm:$0xff]  ;;  %v71_v4 = vld [vmem:[#allocation5 + $0x8] sm:$0xff]  ;;  %v168_v5 = vld [vmem:[#allocation7 + $0x70] sm:$0xff]  ;;  %vm79_vm1 = vcmask 261120   ;;  %s750_s2 = smov [#allocation10]  }
  0x35   :  { %520 = vmatprep.subr.mxu1 %v748_v0  ;;  %552 = vmatprep.mubr.msk.f32.mxu1 %vm749_vm0, %v748_v0  ;;  %v167_v6 = vld [vmem:[#allocation7 + $0x68] sm:$0xff]  ;;  %v70_v7 = vld [vmem:[#allocation5] sm:$0xff]  ;;  %v69_v8 = vld [vmem:[#allocation2] sm:$0xff]  ;;  %s437_s3 = sshll.u32 %s750_s2, 4  ;;  %s438_s3 = int_to_ptr.vmem [resolvable:$true] %s437_s3 }
  0x36   :  { %510 = vmatpush3.msra.mxu0 %v73_v1  ;;  %521 = vmatpush3.msra.mxu1 %v169_v3  ;;  %v166_v9 = vld [vmem:[#allocation7 + $0x60] sm:$0xff]  ;;  %v165_v10 = vld [vmem:[#allocation7 + $0x58] sm:$0xff]  ;;  %v164_v11 = vld [vmem:[#allocation7 + $0x50] sm:$0xff]  ;;  %s714_s9 = scalar_lea.vmem %s438_s3, 128  ;;  %p719_p7 = scmp.lt.s32.totalorder %s438_s3, %s438_s3 }
  0x37   :  { %511 = vmatprep.subr.mxu0 %v748_v0  ;;  %522 = vmatprep.subr.mxu1 %v748_v0  ;;  %v163_v12 = vld [vmem:[#allocation7 + $0x48] sm:$0xff]  ;;  %v162_v13 = vld [vmem:[#allocation7 + $0x40] sm:$0xff]  ;;  %v161_v14 = vld [vmem:[#allocation7 + $0x38] sm:$0xff]  ;;  %p715_p6 = scmp.ne.s32.totalorder %s438_s3, %s714_s9  ;;  %p720_p8 = scmp.lt.s32.totalorder %s714_s9, %s714_s9 }
  0x38   :  { %512 = vmatpush3.msra.mxu0 %v72_v2  ;;  %523 = vmatpush3.msra.mxu1 %v168_v5  ;;  %v160_v15 = vld [vmem:[#allocation7 + $0x30] sm:$0xff]  ;;  %v159_v16 = vld [vmem:[#allocation7 + $0x28] sm:$0xff]  ;;  %v158_v17 = vld [vmem:[#allocation7 + $0x20] sm:$0xff] }
  0x39   :  { %513 = vmatprep.subr.mxu0 %v748_v0  ;;  %524 = vmatprep.subr.mxu1 %v748_v0  ;;  %v157_v18 = vld [vmem:[#allocation7 + $0x18] sm:$0xff]  ;;  %v156_v19 = vld [vmem:[#allocation7 + $0x10] sm:$0xff]  ;;  %v155_v20 = vld [vmem:[#allocation7 + $0x8] sm:$0xff]  ;;  %p721_p9 = por %p720_p8, %p719_p7 }
  0x3a   :  { %514 = vmatpush3.msra.mxu0 %v71_v4  ;;  %525 = vmatpush3.msra.mxu1 %v167_v6  ;;  %v154_v21 = vld [vmem:[#allocation7] sm:$0xff]  ;;  %v261_v22 = vld [vmem:[#allocation7 + $0xf8] sm:$0xff]  ;;  %v260_v23 = vld [vmem:[#allocation7 + $0xf0] sm:$0xff] }
  0x3b   :  { %515 = vmatprep.subr.mxu0 %v748_v0  ;;  %526 = vmatprep.subr.mxu1 %v748_v0  ;;  %v259_v24 = vld [vmem:[#allocation7 + $0xe8] sm:$0xff]  ;;  %v258_v25 = vld [vmem:[#allocation7 + $0xe0] sm:$0xff]  ;;  %v257_v26 = vld [vmem:[#allocation7 + $0xd8] sm:$0xff]  ;;  %p722_p10 = pnand %p721_p9, %p715_p6 }
  0x3c   :  { %516 = vmatpush3.msra.mxu0 %v70_v7  ;;  %527 = vmatpush3.msra.mxu1 %v166_v9  ;;  %v256_v27 = vld [vmem:[#allocation7 + $0xd0] sm:$0xff]  ;;  %v255_v28 = vld [vmem:[#allocation7 + $0xc8] sm:$0xff]  ;;  %v254_v29 = vld [vmem:[#allocation7 + $0xc0] sm:$0xff] }
  0x3d   :  { %518 = vmatmul.mubr.msk.f32.vlgmr.msra.gmra.mxu0 %vm79_vm1, %v69_v8  ;;  %528 = vmatprep.subr.mxu1 %v748_v0  ;;  %v253_v30 = vld [vmem:[#allocation7 + $0xb8] sm:$0xff]  ;;  %v252_v31 = vld [vmem:[#allocation7 + $0xb0] sm:$0xff]  ;;  %v251_v32 = vld [vmem:[#allocation7 + $0xa8] sm:$0xff] }
  0x3e   :  { %555 = vmatprep.subr.mxu0 %v748_v0  ;;  %529 = vmatpush3.msra.mxu1 %v165_v10  ;;  %v250_v33 = vld [vmem:[#allocation7 + $0xa0] sm:$0xff]  ;;  %v249_v34 = vld [vmem:[#allocation7 + $0x98] sm:$0xff]  ;;  %v248_v35 = vld [vmem:[#allocation7 + $0x90] sm:$0xff] }
  0x3f   :  { %587 = vmatprep.mubr.msk.f32.mxu0 %vm749_vm0, %v748_v0  ;;  %530 = vmatprep.subr.mxu1 %v748_v0  ;;  %v448_v36 = vld [vmem:[#allocation8] ss:$0 sm:$0xff]  ;;  %v247_v41 = vld [vmem:[#allocation7 + $0x88] sm:$0xff]  ;;  %v354_v43 = vld [vmem:[#allocation7 + $0x178] sm:$0xff] }
  0x40   :  { %531 = vmatpush3.msra.mxu1 %v164_v11  ;;  %556 = vmatpush3.msra.mxu0 %v261_v22  ;;  %v246_v42 = vld [vmem:[#allocation7 + $0x80] sm:$0xff]  ;;  %v353_v44 = vld [vmem:[#allocation7 + $0x170] sm:$0xff]  ;;  %v352_v45 = vld [vmem:[#allocation7 + $0x168] sm:$0xff] }
  0x41   :  { %532 = vmatprep.subr.mxu1 %v748_v0  ;;  %557 = vmatprep.subr.mxu0 %v748_v0  ;;  %v351_v46 = vld [vmem:[#allocation7 + $0x160] sm:$0xff]  ;;  %v350_v47 = vld [vmem:[#allocation7 + $0x158] sm:$0xff]  ;;  %v349_v48 = vld [vmem:[#allocation7 + $0x150] sm:$0xff] }
  0x42   :  { %533 = vmatpush3.msra.mxu1 %v163_v12  ;;  %558 = vmatpush3.msra.mxu0 %v260_v23  ;;  %v348_v49 = vld [vmem:[#allocation7 + $0x148] sm:$0xff]  ;;  %v347_v50 = vld [vmem:[#allocation7 + $0x140] sm:$0xff]  ;;  %v346_v51 = vld [vmem:[#allocation7 + $0x138] sm:$0xff] }
  0x43   :  { %534 = vmatprep.subr.mxu1 %v748_v0  ;;  %559 = vmatprep.subr.mxu0 %v748_v0  ;;  %v345_v52 = vld [vmem:[#allocation7 + $0x130] sm:$0xff]  ;;  %v344_v53 = vld [vmem:[#allocation7 + $0x128] sm:$0xff]  ;;  %v343_v54 = vld [vmem:[#allocation7 + $0x120] sm:$0xff] }
  0x44   :  { %535 = vmatpush3.msra.mxu1 %v162_v13  ;;  %560 = vmatpush3.msra.mxu0 %v259_v24  ;;  %v342_v55 = vld [vmem:[#allocation7 + $0x118] sm:$0xff]  ;;  %v450_v56 = vld [vmem:[#allocation8 + $0x1] ss:$0 sm:$0xff]  ;;  %v341_v60 = vld [vmem:[#allocation7 + $0x110] sm:$0xff] }
  0x45   :  { %536 = vmatprep.subr.mxu1 %v748_v0  ;;  %561 = vmatprep.subr.mxu0 %v748_v0  ;;  %v340_v61 = vld [vmem:[#allocation7 + $0x108] sm:$0xff]  ;;  %v339_v62 = vld [vmem:[#allocation7 + $0x100] sm:$0xff] }
  0x46   :  { %537 = vmatpush3.msra.mxu1 %v161_v14  ;;  %562 = vmatpush3.msra.mxu0 %v258_v25  ;;  %v451_v63 = vld [vmem:[#allocation8 + $0x2] ss:$0 sm:$0xff]  ;;  %v452_v5 = vld [vmem:[#allocation8 + $0x3] ss:$0 sm:$0xff] }
  0x47   :  { %538 = vmatprep.subr.mxu1 %v748_v0  ;;  %563 = vmatprep.subr.mxu0 %v748_v0 }
  0x48   :  { %539 = vmatpush3.msra.mxu1 %v160_v15  ;;  %564 = vmatpush3.msra.mxu0 %v257_v26 }
  0x49   :  { %540 = vmatprep.subr.mxu1 %v748_v0  ;;  %565 = vmatprep.subr.mxu0 %v748_v0 }
  0x4a   :  { %541 = vmatpush3.msra.mxu1 %v159_v16  ;;  %566 = vmatpush3.msra.mxu0 %v256_v27 }
  0x4b   :  { %542 = vmatprep.subr.mxu1 %v748_v0  ;;  %567 = vmatprep.subr.mxu0 %v748_v0 }
  0x4c   :  { %543 = vmatpush3.msra.mxu1 %v158_v17  ;;  %568 = vmatpush3.msra.mxu0 %v255_v28 }
  0x4d   :  { %544 = vmatprep.subr.mxu1 %v748_v0  ;;  %569 = vmatprep.subr.mxu0 %v748_v0 }
  0x4e   :  { %545 = vmatpush3.msra.mxu1 %v157_v18  ;;  %570 = vmatpush3.msra.mxu0 %v254_v29 }
  0x4f   :  { %546 = vmatprep.subr.mxu1 %v748_v0  ;;  %571 = vmatprep.subr.mxu0 %v748_v0 }
  0x50   :  { %547 = vmatpush3.msra.mxu1 %v156_v19  ;;  %572 = vmatpush3.msra.mxu0 %v253_v30 }
  0x51   :  { %548 = vmatprep.subr.mxu1 %v748_v0  ;;  %573 = vmatprep.subr.mxu0 %v748_v0 }
  0x52   :  { %549 = vmatpush3.msra.mxu1 %v155_v20  ;;  %574 = vmatpush3.msra.mxu0 %v252_v31 }
  0x53   :  { %550 = vmatprep.subr.mxu1 %v748_v0  ;;  %575 = vmatprep.subr.mxu0 %v748_v0 }
  0x54   :  { %551 = vmatpush3.msra.mxu1 %v154_v21  ;;  %576 = vmatpush3.msra.mxu0 %v251_v32 }
  0x55   :  { %590 = vmatprep.subr.mxu1 %v748_v0  ;;  %577 = vmatprep.subr.mxu0 %v748_v0 }
  0x56   :  { %578 = vmatpush3.msra.mxu0 %v250_v33 }
  0x57   :  { %579 = vmatprep.subr.mxu0 %v748_v0 }
  0x58   :  { %580 = vmatpush3.msra.mxu0 %v249_v34 }
  0x59   :  { %581 = vmatprep.subr.mxu0 %v748_v0 }
  0x5a   :  { %582 = vmatpush3.msra.mxu0 %v248_v35 }
  0x5b   :  { %583 = vmatprep.subr.mxu0 %v748_v0 }
  0x5c   :  { %584 = vmatpush3.msra.mxu0 %v247_v41 }
  0x5d   :  { %585 = vmatprep.subr.mxu0 %v748_v0 }
  0x5e   :  { %586 = vmatpush3.msra.mxu0 %v246_v42 }
  0xfd   :  { %v149_v37 = vpop.f32.mrf.mxu0 }
  0xfe   :  { %v150_v38 = vadd.f32 %v448_v36, %v149_v37 }
  0xff   :  { %v519_v39 = vpop.f32.mrf.mxu0 }
 0x100   :  { %v153_v40 = vmax.f32 %v150_v38, 0.0 }
 0x102   :  { %553 = vmatmul.mubr.f32.vlgmr.msra.gmra.mxu1 %v153_v40 }
 0x103   :  { %622 = vmatprep.mubr.msk.f32.mxu1 %vm749_vm0, %v748_v0  ;;  %591 = vmatpush3.msra.mxu1 %v354_v43 }
 0x104   :  { %592 = vmatprep.subr.mxu1 %v748_v0 }
 0x105   :  { %593 = vmatpush3.msra.mxu1 %v353_v44 }
 0x106   :  { %594 = vmatprep.subr.mxu1 %v748_v0 }
 0x107   :  { %595 = vmatpush3.msra.mxu1 %v352_v45 }
 0x108   :  { %596 = vmatprep.subr.mxu1 %v748_v0 }
 0x109   :  { %597 = vmatpush3.msra.mxu1 %v351_v46 }
 0x10a   :  { %598 = vmatprep.subr.mxu1 %v748_v0 }
 0x10b   :  { %599 = vmatpush3.msra.mxu1 %v350_v47 }
 0x10c   :  { %600 = vmatprep.subr.mxu1 %v748_v0 }
 0x10d   :  { %601 = vmatpush3.msra.mxu1 %v349_v48 }
 0x10e   :  { %602 = vmatprep.subr.mxu1 %v748_v0 }
 0x10f   :  { %603 = vmatpush3.msra.mxu1 %v348_v49 }
 0x110   :  { %604 = vmatprep.subr.mxu1 %v748_v0 }
 0x111   :  { %605 = vmatpush3.msra.mxu1 %v347_v50 }
 0x112   :  { %606 = vmatprep.subr.mxu1 %v748_v0 }
 0x113   :  { %607 = vmatpush3.msra.mxu1 %v346_v51 }
 0x114   :  { %608 = vmatprep.subr.mxu1 %v748_v0 }
 0x115   :  { %609 = vmatpush3.msra.mxu1 %v345_v52 }
 0x116   :  { %610 = vmatprep.subr.mxu1 %v748_v0 }
 0x117   :  { %611 = vmatpush3.msra.mxu1 %v344_v53 }
 0x118   :  { %612 = vmatprep.subr.mxu1 %v748_v0 }
 0x119   :  { %613 = vmatpush3.msra.mxu1 %v343_v54 }
 0x11a   :  { %614 = vmatprep.subr.mxu1 %v748_v0 }
 0x11b   :  { %615 = vmatpush3.msra.mxu1 %v342_v55 }
 0x11c   :  { %616 = vmatprep.subr.mxu1 %v748_v0 }
 0x11d   :  { %617 = vmatpush3.msra.mxu1 %v341_v60 }
 0x11e   :  { %618 = vmatprep.subr.mxu1 %v748_v0 }
 0x11f   :  { %619 = vmatpush3.msra.mxu1 %v340_v61 }
 0x120   :  { %620 = vmatprep.subr.mxu1 %v748_v0 }
 0x121   :  { %621 = vmatpush3.msra.mxu1 %v339_v62 }
 0x1c2   :  { %v241_v57 = vpop.f32.mrf.mxu1 }
 0x1c3   :  { %v242_v58 = vadd.f32 %v450_v56, %v241_v57 }
 0x1c4   :  { %v554_v59 = vpop.f32.mrf.mxu1 }
 0x1c5   :  { %588 = vmatmul.mubr.f32.vlgmr.msra.gmra.mxu0 %v242_v58 }
 0x285   :  { %v333_v1 = vpop.f32.mrf.mxu0 }
 0x286   :  { %v334_v2 = vadd.f32 %v451_v63, %v333_v1 }
 0x287   :  { %v589_v3 = vpop.f32.mrf.mxu0 }
 0x288   :  { %v337_v4 = vmax.f32 %v334_v2, 0.0 }
 0x28a   :  { %623 = vmatmul.mubr.f32.vlgmr.msra.gmra.mxu1 %v337_v4 }
 0x34a   :  { %v426_v6 = vpop.f32.mrf.mxu1 }
 0x34b   :  { %v427_v7 = vadd.f32 %v452_v5, %v426_v6 }
 0x34c   :  { %v624_v8 = vpop.f32.mrf.mxu1 }
 0x34d   :  { %430 = vst [vmem:[#allocation10] sm:$0xff] %v427_v7 }
 0x34e   :  { %725 = shalt.err (!%p722_p10)
}
 0x34f   :  { %440 = dma.vmem_to_hbm [thread:$0]  %s438_s3, 128, %s855_s4, [#allocation4]  }
 0x350   :  { %740 = dma.done.wait [#allocation4], 128  }
 0x351   :  { %741 = vsyncadd [#allocation4], 4294967168 }
 0x352   :  { %444 = vsyncpa [#allocation3], 1 }
 0x353   :  { %445 = vsyncpa [#allocation6], 1 }
 0x354   :  { %446 = vsyncpa [#allocation9], 1 }
 0x355   :  { %447 = vsyncpa [#allocation4], 1 }

</bundles_post_ra>
